<compile_context>
chip_gen: v6e
topology: v6e:2x2x1
jax: 0.10.0
libtpu: 0.0.40
codegen_flags: <defaults>
</compile_context>

<pallas_src>
import functools

import jax
import jax.numpy as jnp
from jax import lax
from jax.experimental import pallas as pl
from jax.experimental.pallas import tpu as pltpu

THRESHOLD = 1.0
DECAY = 0.9

_LANES = 128   # lane width of a vreg
_PACK = 16     # bf16 sublane packing (16 sublanes per bf16 vreg)


def _round_up(a, b):
    return ((a + b - 1) // b) * b


def _vmem_capacity_bytes():
    try:
        return int(pltpu.get_tpu_info().vmem_capacity_bytes)
    except Exception:
        return 64 << 20  # conservative: v7x per-TensorCore VMEM


def _lif_kernel(mem0_ref, x_ref, spike_ref, mem_ref, *,
                tc, chunk_rows, decay, threshold, t_real, time_padded, unroll):
    """mem0_ref: (R_tile, 128) f32 initial membrane (read once at tb==0)
    x_ref:     (tc, R_tile, 128) f32 input slab
    spike_ref: (tc, R_tile, 128) bf16 spike output slab
    mem_ref:   (R_tile, 128) f32 membrane accumulator; its block index is
               constant along the sequential time axis so it stays VMEM
               resident and is written back to HBM once per feature tile."""
    tb = pl.program_id(1)  # time-block index (inner, "arbitrary" grid axis)

    @pl.when(tb == 0)
    def _():
        mem_ref[...] = mem0_ref[...]

    n_chunks = mem_ref.shape[0] // chunk_rows

    def run_chunk(r0):
        # Membrane carry for this chunk: chunk_rows x 128 f32 = 2 vregs.
        mem = mem_ref[pl.ds(r0, chunk_rows), :]

        def step(t, mem):
            new_mem = decay * mem + x_ref[t, pl.ds(r0, chunk_rows), :]
            spiked = new_mem >= threshold                      # compare reused
            spike_ref[t, pl.ds(r0, chunk_rows), :] = spiked.astype(
                spike_ref.dtype)
            new_mem = jnp.where(spiked, 0.0, new_mem)          # fused reset
            if time_padded:
                # Back-padded timesteps must not touch the membrane (keeps the
                # trajectory exact for any incoming membrane value).
                valid = (tb * tc + t) < t_real
                new_mem = jnp.where(valid, new_mem, mem)
            return new_mem

        mem = lax.fori_loop(0, tc, step, mem, unroll=unroll)
        mem_ref[pl.ds(r0, chunk_rows), :] = mem

    if n_chunks == 1:
        run_chunk(0)
    else:
        @pl.loop(0, n_chunks)
        def _(c):
            run_chunk(pl.multiple_of(c * chunk_rows, chunk_rows))


def spiking_neuron_forward(x, membrane_init=None, *,
                           threshold=THRESHOLD, decay=DECAY,
                           time_chunk=32, feat_tile_rows=256):
    """x: (T, B, H) float32; membrane_init: None (=> zeros, as in the module
    __init__) or scalar / (B, H) float32 carried over from a previous call.

    Returns:
      spikes:   (T, B, H) bfloat16, values exactly {0, 1}
      membrane: (B, H)    float32, final membrane potential (module state)
    """
    T, B, H = x.shape
    x = x.astype(jnp.float32)
    n = B * H

    # --- lane/sublane-dense feature layout: (B, H) -> (rows_pad, 128) ---
    rows = pl.cdiv(n, _LANES)
    rows_rounded = _round_up(rows, _PACK)
    ftr = min(_round_up(max(feat_tile_rows, _PACK), _PACK), rows_rounded)
    # v7x has 2 TensorCores sharing HBM: make sure the "parallel" feature axis
    # has >= 2 tiles whenever there is enough work to split.
    if rows_rounded // ftr < 2 and rows_rounded >= 2 * _PACK:
        ftr = _round_up(pl.cdiv(rows_rounded, 2), _PACK)
    rows_pad = _round_up(rows, ftr)
    n_pad = rows_pad * _LANES
    n_feat_tiles = rows_pad // ftr

    # --- time chunking: back-pad (masked in-kernel), rebalanced so the tail
    #     padding is minimal ---
    tc = max(1, min(time_chunk, T))
    n_time_blocks = pl.cdiv(T, tc)
    tc = pl.cdiv(T, n_time_blocks)
    t_pad = n_time_blocks * tc
    time_padded = t_pad != T
    feat_padded = n_pad != n

    x_flat = x.reshape(T, n)
    if time_padded or feat_padded:
        x_flat = jnp.pad(x_flat, ((0, t_pad - T), (0, n_pad - n)))
    x_blk = x_flat.reshape(t_pad, rows_pad, _LANES)

    if membrane_init is None:
        mem0 = jnp.zeros((rows_pad, _LANES), jnp.float32)
    else:
        m0 = jnp.broadcast_to(jnp.asarray(membrane_init, jnp.float32),
                              (B, H)).reshape(n)
        if feat_padded:
            m0 = jnp.pad(m0, (0, n_pad - n))
        mem0 = m0.reshape(rows_pad, _LANES)

    chunk_rows = _PACK                 # 16 sublanes => fully packed bf16 store
    unroll = min(tc, 8)                # partial unroll keeps live ranges bounded

    kernel = functools.partial(
        _lif_kernel, tc=tc, chunk_rows=chunk_rows, decay=float(decay),
        threshold=float(threshold), t_real=T, time_padded=time_padded,
        unroll=unroll)

    # VMEM budget from the actual double-buffered block footprint.
    blk_in = tc * ftr * _LANES * 4
    blk_spk = tc * ftr * _LANES * 2
    blk_mem = ftr * _LANES * 4
    needed = 2 * (blk_in + blk_spk) + 2 * blk_mem + 2 * blk_mem
    cap = _vmem_capacity_bytes()
    vmem_limit = min(max(needed + (8 << 20), 32 << 20), (3 * cap) // 4)
    vmem_limit = int(max(vmem_limit, needed + (1 << 20)))

    cost = pl.CostEstimate(
        flops=5 * t_pad * rows_pad * _LANES,
        transcendentals=0,
        bytes_accessed=t_pad * rows_pad * _LANES * (4 + 2)
        + 2 * rows_pad * _LANES * 4,
    )

    spikes_p, mem_p = pl.pallas_call(
        kernel,
        out_shape=(
            jax.ShapeDtypeStruct((t_pad, rows_pad, _LANES), jnp.bfloat16),
            jax.ShapeDtypeStruct((rows_pad, _LANES), jnp.float32),
        ),
        grid_spec=pltpu.PrefetchScalarGridSpec(
            num_scalar_prefetch=0,
            # (feature tiles, time blocks): features are independent, time is a
            # true recurrence and must stay the sequential inner axis.
            grid=(n_feat_tiles, n_time_blocks),
            in_specs=[
                # Initial membrane: constant block index along time -> fetched
                # once per feature tile.
                pl.BlockSpec((ftr, _LANES), lambda f, t: (f, 0)),
                pl.BlockSpec((tc, ftr, _LANES), lambda f, t: (t, f, 0)),
            ],
            out_specs=(
                pl.BlockSpec((tc, ftr, _LANES), lambda f, t: (t, f, 0)),
                # Constant block index along time -> stays resident in VMEM and
                # doubles as the membrane accumulator; keyed on the feature
                # tile so parallel tiles never share state.
                pl.BlockSpec((ftr, _LANES), lambda f, t: (f, 0)),
            ),
        ),
        compiler_params=pltpu.CompilerParams(
            dimension_semantics=("parallel", "arbitrary"),
            vmem_limit_bytes=vmem_limit,
        ),
        cost_estimate=cost,
    )(mem0, x_blk)

    # Zero-copy fast path when no padding was applied; otherwise crop.
    if time_padded or feat_padded:
        spikes = spikes_p[:T].reshape(T, n_pad)[:, :n].reshape(T, B, H)
        mem_final = mem_p.reshape(n_pad)[:n].reshape(B, H)
    else:
        spikes = spikes_p.reshape(T, B, H)
        mem_final = mem_p.reshape(B, H)
    # TODO(synk): `spike_history.append(spike.item())` is host-side Python list
    # bookkeeping with no kernel equivalent; the per-timestep `spikes` output
    # is the history.
    return spikes, mem_final


def _reference(x, membrane_init=None, threshold=THRESHOLD, decay=DECAY):
    """Pure-JAX reference replicating the PyTorch per-timestep update."""
    x = x.astype(jnp.float32)
    if membrane_init is None:
        mem0 = jnp.zeros(x.shape[1:], jnp.float32)
    else:
        mem0 = jnp.broadcast_to(jnp.asarray(membrane_init, jnp.float32),
                                x.shape[1:])

    def step(mem, xt):
        mem = decay * mem + xt
        spike = (mem >= threshold).astype(jnp.float32)
        mem = mem * (1.0 - spike)
        return mem, spike

    mem_final, spikes = lax.scan(step, mem0, x)
    return spikes, mem_final


if __name__ == "__main__":
    key = jax.random.PRNGKey(0)
    k1, k2, k3 = jax.random.split(key, 3)

    # Case 1: aligned shapes -> zero-copy path, 2 feature tiles (megacore),
    # 2 row chunks per tile, fully unrolled time loop.
    T1, B1, H1 = 8, 8, 1024
    x1 = 1.5 * jax.random.normal(k1, (T1, B1, H1), dtype=jnp.float32)
    spikes1, mem1 = jax.jit(spiking_neuron_forward)(x1)
    jax.block_until_ready((spikes1, mem1))
    ref_s1, ref_m1 = _reference(x1)
    assert jnp.array_equal(spikes1.astype(jnp.float32), ref_s1), \
        "case1: spike mismatch vs reference"
    assert jnp.allclose(mem1, ref_m1, atol=1e-5), \
        "case1: membrane mismatch vs reference"

    # Case 2: ragged time/features + nonzero initial membrane (state carried
    # across forward() calls, as in the PyTorch module) -> masked padded path.
    T2, B2, H2 = 7, 2, 100
    x2 = 1.5 * jax.random.normal(k2, (T2, B2, H2), dtype=jnp.float32)
    m0 = 0.5 * jax.random.uniform(k3, (B2, H2), dtype=jnp.float32)
    fwd2 = jax.jit(functools.partial(spiking_neuron_forward, time_chunk=4))
    spikes2, mem2 = fwd2(x2, m0)
    jax.block_until_ready((spikes2, mem2))
    ref_s2, ref_m2 = _reference(x2, m0)
    assert jnp.array_equal(spikes2.astype(jnp.float32), ref_s2), \
        "case2: spike mismatch vs reference"
    assert jnp.allclose(mem2, ref_m2, atol=1e-5), \
        "case2: membrane mismatch vs reference"

    print("KERNEL_OK")
</pallas_src>

<mosaic_0001>
module attributes {stable_mosaic.version = 11 : i64} {
  func.func @_lif_kernel(%arg0: i32, %arg1: i32, %arg2: memref<32x128xf32, #tpu.memory_space<vmem>>, %arg3: memref<8x32x128xf32, #tpu.memory_space<vmem>>, %arg4: memref<8x32x128xbf16, #tpu.memory_space<vmem>>, %arg5: memref<32x128xf32, #tpu.memory_space<vmem>>) attributes {dimension_semantics = [#tpu.dimension_semantics<parallel>, #tpu.dimension_semantics<arbitrary>], iteration_bounds = array<i64: 2, 1>, scalar_prefetch = 0 : i64, scratch_operands = 0 : i64, tpu.core_type = #tpu.core_type<tc>, window_params = [{transform_indices = @transform_0, window_bounds = array<i64: 32, 128>}, {transform_indices = @transform_1, window_bounds = array<i64: 8, 32, 128>}, {transform_indices = @transform_2, window_bounds = array<i64: 8, 32, 128>}, {transform_indices = @transform_3, window_bounds = array<i64: 32, 128>}]} {
    %c0_i32 = arith.constant 0 : i32
    %0 = arith.cmpi eq, %arg1, %c0_i32 : i32
    %1 = arith.extui %0 : i1 to i32
    %c0_i32_0 = arith.constant 0 : i32
    %2 = arith.cmpi ne, %1, %c0_i32_0 : i32
    scf.if %2 {
      %c0 = arith.constant 0 : index
      %c0_3 = arith.constant 0 : index
      %4 = vector.load %arg2[%c0, %c0_3] : memref<32x128xf32, #tpu.memory_space<vmem>>, vector<32x128xf32>
      %c0_4 = arith.constant 0 : index
      %c0_5 = arith.constant 0 : index
      %5 = vector.load %arg5[%c0_4, %c0_5] : memref<32x128xf32, #tpu.memory_space<vmem>>, vector<32x128xf32>
      tpu.vector_store %arg5[%c0_4, %c0_5], %4 {strides = array<i32>} : memref<32x128xf32, #tpu.memory_space<vmem>>, vector<32x128xf32>,
    } else {
    }
    %c0_i32_1 = arith.constant 0 : i32
    %c2_i32 = arith.constant 2 : i32
    %3 = arith.addi %c0_i32_1, %c2_i32 : i32
    %c1_i32 = arith.constant 1 : i32
    scf.for %arg6 = %c0_i32_1 to %3 step %c1_i32  : i32 {
      %c1_i32_3 = arith.constant 1 : i32
      %4 = arith.muli %arg6, %c1_i32_3 : i32
      %c0_i32_4 = arith.constant 0 : i32
      %5 = arith.addi %c0_i32_4, %4 : i32
      %c16_i32 = arith.constant 16 : i32
      %6 = arith.muli %5, %c16_i32 : i32
      %7 = tpu.assume_multiple %6, 16 : i32
      %8 = arith.index_cast %7 : i32 to index
      %c0 = arith.constant 0 : index
      %9 = vector.load %arg5[%8, %c0] : memref<32x128xf32, #tpu.memory_space<vmem>>, vector<16x128xf32>
      %c0_i32_5 = arith.constant 0 : i32
      %cst = arith.constant 0.899999976 : f32
      %10 = vector.broadcast %cst : f32 to vector<16x128xf32>
      %11 = arith.mulf %10, %9 : vector<16x128xf32>
      %12 = arith.index_cast %c0_i32_5 : i32 to index
      %13 = arith.index_cast %7 : i32 to index
      %c0_6 = arith.constant 0 : index
      %14 = vector.load %arg3[%12, %13, %c0_6] : memref<8x32x128xf32, #tpu.memory_space<vmem>>, vector<1x16x128xf32>
      %15 = vector.shape_cast %14 : vector<1x16x128xf32> to vector<16x128xf32>
      %16 = arith.addf %11, %15 : vector<16x128xf32>
      %cst_7 = arith.constant 1.000000e+00 : f32
      %17 = vector.broadcast %cst_7 : f32 to vector<16x128xf32>
      %18 = arith.cmpf oge, %16, %17 : vector<16x128xf32>
      %19 = arith.extui %18 : vector<16x128xi1> to vector<16x128xi32>
      %20 = arith.sitofp %19 : vector<16x128xi32> to vector<16x128xf32>
      %21 = arith.truncf %20 : vector<16x128xf32> to vector<16x128xbf16>
      %22 = arith.index_cast %c0_i32_5 : i32 to index
      %23 = arith.index_cast %7 : i32 to index
      %c0_8 = arith.constant 0 : index
      %24 = vector.load %arg4[%22, %23, %c0_8] : memref<8x32x128xbf16, #tpu.memory_space<vmem>>, vector<1x16x128xbf16>
      %25 = vector.shape_cast %24 : vector<1x16x128xbf16> to vector<16x128xbf16>
      %26 = vector.shape_cast %21 : vector<16x128xbf16> to vector<1x16x128xbf16>
      tpu.vector_store %arg4[%22, %23, %c0_8], %26 {strides = array<i32>} : memref<8x32x128xbf16, #tpu.memory_space<vmem>>, vector<1x16x128xbf16>,
      %cst_9 = arith.constant 0.000000e+00 : f32
      %27 = vector.broadcast %cst_9 : f32 to vector<16x128xf32>
      %28 = arith.select %18, %27, %16 : vector<16x128xi1>, vector<16x128xf32>
      %c1_i32_10 = arith.constant 1 : i32
      %cst_11 = arith.constant 0.899999976 : f32
      %29 = vector.broadcast %cst_11 : f32 to vector<16x128xf32>
      %30 = arith.mulf %29, %28 : vector<16x128xf32>
      %31 = arith.index_cast %c1_i32_10 : i32 to index
      %32 = arith.index_cast %7 : i32 to index
      %c0_12 = arith.constant 0 : index
      %33 = vector.load %arg3[%31, %32, %c0_12] : memref<8x32x128xf32, #tpu.memory_space<vmem>>, vector<1x16x128xf32>
      %34 = vector.shape_cast %33 : vector<1x16x128xf32> to vector<16x128xf32>
      %35 = arith.addf %30, %34 : vector<16x128xf32>
      %cst_13 = arith.constant 1.000000e+00 : f32
      %36 = vector.broadcast %cst_13 : f32 to vector<16x128xf32>
      %37 = arith.cmpf oge, %35, %36 : vector<16x128xf32>
      %38 = arith.extui %37 : vector<16x128xi1> to vector<16x128xi32>
      %39 = arith.sitofp %38 : vector<16x128xi32> to vector<16x128xf32>
      %40 = arith.truncf %39 : vector<16x128xf32> to vector<16x128xbf16>
      %41 = arith.index_cast %c1_i32_10 : i32 to index
      %42 = arith.index_cast %7 : i32 to index
      %c0_14 = arith.constant 0 : index
      %43 = vector.load %arg4[%41, %42, %c0_14] : memref<8x32x128xbf16, #tpu.memory_space<vmem>>, vector<1x16x128xbf16>
      %44 = vector.shape_cast %43 : vector<1x16x128xbf16> to vector<16x128xbf16>
      %45 = vector.shape_cast %40 : vector<16x128xbf16> to vector<1x16x128xbf16>
      tpu.vector_store %arg4[%41, %42, %c0_14], %45 {strides = array<i32>} : memref<8x32x128xbf16, #tpu.memory_space<vmem>>, vector<1x16x128xbf16>,
      %cst_15 = arith.constant 0.000000e+00 : f32
      %46 = vector.broadcast %cst_15 : f32 to vector<16x128xf32>
      %47 = arith.select %37, %46, %35 : vector<16x128xi1>, vector<16x128xf32>
      %c2_i32_16 = arith.constant 2 : i32
      %cst_17 = arith.constant 0.899999976 : f32
      %48 = vector.broadcast %cst_17 : f32 to vector<16x128xf32>
      %49 = arith.mulf %48, %47 : vector<16x128xf32>
      %50 = arith.index_cast %c2_i32_16 : i32 to index
      %51 = arith.index_cast %7 : i32 to index
      %c0_18 = arith.constant 0 : index
      %52 = vector.load %arg3[%50, %51, %c0_18] : memref<8x32x128xf32, #tpu.memory_space<vmem>>, vector<1x16x128xf32>
      %53 = vector.shape_cast %52 : vector<1x16x128xf32> to vector<16x128xf32>
      %54 = arith.addf %49, %53 : vector<16x128xf32>
      %cst_19 = arith.constant 1.000000e+00 : f32
      %55 = vector.broadcast %cst_19 : f32 to vector<16x128xf32>
      %56 = arith.cmpf oge, %54, %55 : vector<16x128xf32>
      %57 = arith.extui %56 : vector<16x128xi1> to vector<16x128xi32>
      %58 = arith.sitofp %57 : vector<16x128xi32> to vector<16x128xf32>
      %59 = arith.truncf %58 : vector<16x128xf32> to vector<16x128xbf16>
      %60 = arith.index_cast %c2_i32_16 : i32 to index
      %61 = arith.index_cast %7 : i32 to index
      %c0_20 = arith.constant 0 : index
      %62 = vector.load %arg4[%60, %61, %c0_20] : memref<8x32x128xbf16, #tpu.memory_space<vmem>>, vector<1x16x128xbf16>
      %63 = vector.shape_cast %62 : vector<1x16x128xbf16> to vector<16x128xbf16>
      %64 = vector.shape_cast %59 : vector<16x128xbf16> to vector<1x16x128xbf16>
      tpu.vector_store %arg4[%60, %61, %c0_20], %64 {strides = array<i32>} : memref<8x32x128xbf16, #tpu.memory_space<vmem>>, vector<1x16x128xbf16>,
      %cst_21 = arith.constant 0.000000e+00 : f32
      %65 = vector.broadcast %cst_21 : f32 to vector<16x128xf32>
      %66 = arith.select %56, %65, %54 : vector<16x128xi1>, vector<16x128xf32>
      %c3_i32 = arith.constant 3 : i32
      %cst_22 = arith.constant 0.899999976 : f32
      %67 = vector.broadcast %cst_22 : f32 to vector<16x128xf32>
      %68 = arith.mulf %67, %66 : vector<16x128xf32>
      %69 = arith.index_cast %c3_i32 : i32 to index
      %70 = arith.index_cast %7 : i32 to index
      %c0_23 = arith.constant 0 : index
      %71 = vector.load %arg3[%69, %70, %c0_23] : memref<8x32x128xf32, #tpu.memory_space<vmem>>, vector<1x16x128xf32>
      %72 = vector.shape_cast %71 : vector<1x16x128xf32> to vector<16x128xf32>
      %73 = arith.addf %68, %72 : vector<16x128xf32>
      %cst_24 = arith.constant 1.000000e+00 : f32
      %74 = vector.broadcast %cst_24 : f32 to vector<16x128xf32>
      %75 = arith.cmpf oge, %73, %74 : vector<16x128xf32>
      %76 = arith.extui %75 : vector<16x128xi1> to vector<16x128xi32>
      %77 = arith.sitofp %76 : vector<16x128xi32> to vector<16x128xf32>
      %78 = arith.truncf %77 : vector<16x128xf32> to vector<16x128xbf16>
      %79 = arith.index_cast %c3_i32 : i32 to index
      %80 = arith.index_cast %7 : i32 to index
      %c0_25 = arith.constant 0 : index
      %81 = vector.load %arg4[%79, %80, %c0_25] : memref<8x32x128xbf16, #tpu.memory_space<vmem>>, vector<1x16x128xbf16>
      %82 = vector.shape_cast %81 : vector<1x16x128xbf16> to vector<16x128xbf16>
      %83 = vector.shape_cast %78 : vector<16x128xbf16> to vector<1x16x128xbf16>
      tpu.vector_store %arg4[%79, %80, %c0_25], %83 {strides = array<i32>} : memref<8x32x128xbf16, #tpu.memory_space<vmem>>, vector<1x16x128xbf16>,
      %cst_26 = arith.constant 0.000000e+00 : f32
      %84 = vector.broadcast %cst_26 : f32 to vector<16x128xf32>
      %85 = arith.select %75, %84, %73 : vector<16x128xi1>, vector<16x128xf32>
      %c4_i32 = arith.constant 4 : i32
      %cst_27 = arith.constant 0.899999976 : f32
      %86 = vector.broadcast %cst_27 : f32 to vector<16x128xf32>
      %87 = arith.mulf %86, %85 : vector<16x128xf32>
      %88 = arith.index_cast %c4_i32 : i32 to index
      %89 = arith.index_cast %7 : i32 to index
      %c0_28 = arith.constant 0 : index
      %90 = vector.load %arg3[%88, %89, %c0_28] : memref<8x32x128xf32, #tpu.memory_space<vmem>>, vector<1x16x128xf32>
      %91 = vector.shape_cast %90 : vector<1x16x128xf32> to vector<16x128xf32>
      %92 = arith.addf %87, %91 : vector<16x128xf32>
      %cst_29 = arith.constant 1.000000e+00 : f32
      %93 = vector.broadcast %cst_29 : f32 to vector<16x128xf32>
      %94 = arith.cmpf oge, %92, %93 : vector<16x128xf32>
      %95 = arith.extui %94 : vector<16x128xi1> to vector<16x128xi32>
      %96 = arith.sitofp %95 : vector<16x128xi32> to vector<16x128xf32>
      %97 = arith.truncf %96 : vector<16x128xf32> to vector<16x128xbf16>
      %98 = arith.index_cast %c4_i32 : i32 to index
      %99 = arith.index_cast %7 : i32 to index
      %c0_30 = arith.constant 0 : index
      %100 = vector.load %arg4[%98, %99, %c0_30] : memref<8x32x128xbf16, #tpu.memory_space<vmem>>, vector<1x16x128xbf16>
      %101 = vector.shape_cast %100 : vector<1x16x128xbf16> to vector<16x128xbf16>
      %102 = vector.shape_cast %97 : vector<16x128xbf16> to vector<1x16x128xbf16>
      tpu.vector_store %arg4[%98, %99, %c0_30], %102 {strides = array<i32>} : memref<8x32x128xbf16, #tpu.memory_space<vmem>>, vector<1x16x128xbf16>,
      %cst_31 = arith.constant 0.000000e+00 : f32
      %103 = vector.broadcast %cst_31 : f32 to vector<16x128xf32>
      %104 = arith.select %94, %103, %92 : vector<16x128xi1>, vector<16x128xf32>
      %c5_i32 = arith.constant 5 : i32
      %cst_32 = arith.constant 0.899999976 : f32
      %105 = vector.broadcast %cst_32 : f32 to vector<16x128xf32>
      %106 = arith.mulf %105, %104 : vector<16x128xf32>
      %107 = arith.index_cast %c5_i32 : i32 to index
      %108 = arith.index_cast %7 : i32 to index
      %c0_33 = arith.constant 0 : index
      %109 = vector.load %arg3[%107, %108, %c0_33] : memref<8x32x128xf32, #tpu.memory_space<vmem>>, vector<1x16x128xf32>
      %110 = vector.shape_cast %109 : vector<1x16x128xf32> to vector<16x128xf32>
      %111 = arith.addf %106, %110 : vector<16x128xf32>
      %cst_34 = arith.constant 1.000000e+00 : f32
      %112 = vector.broadcast %cst_34 : f32 to vector<16x128xf32>
      %113 = arith.cmpf oge, %111, %112 : vector<16x128xf32>
      %114 = arith.extui %113 : vector<16x128xi1> to vector<16x128xi32>
      %115 = arith.sitofp %114 : vector<16x128xi32> to vector<16x128xf32>
      %116 = arith.truncf %115 : vector<16x128xf32> to vector<16x128xbf16>
      %117 = arith.index_cast %c5_i32 : i32 to index
      %118 = arith.index_cast %7 : i32 to index
      %c0_35 = arith.constant 0 : index
      %119 = vector.load %arg4[%117, %118, %c0_35] : memref<8x32x128xbf16, #tpu.memory_space<vmem>>, vector<1x16x128xbf16>
      %120 = vector.shape_cast %119 : vector<1x16x128xbf16> to vector<16x128xbf16>
      %121 = vector.shape_cast %116 : vector<16x128xbf16> to vector<1x16x128xbf16>
      tpu.vector_store %arg4[%117, %118, %c0_35], %121 {strides = array<i32>} : memref<8x32x128xbf16, #tpu.memory_space<vmem>>, vector<1x16x128xbf16>,
      %cst_36 = arith.constant 0.000000e+00 : f32
      %122 = vector.broadcast %cst_36 : f32 to vector<16x128xf32>
      %123 = arith.select %113, %122, %111 : vector<16x128xi1>, vector<16x128xf32>
      %c6_i32 = arith.constant 6 : i32
      %cst_37 = arith.constant 0.899999976 : f32
      %124 = vector.broadcast %cst_37 : f32 to vector<16x128xf32>
      %125 = arith.mulf %124, %123 : vector<16x128xf32>
      %126 = arith.index_cast %c6_i32 : i32 to index
      %127 = arith.index_cast %7 : i32 to index
      %c0_38 = arith.constant 0 : index
      %128 = vector.load %arg3[%126, %127, %c0_38] : memref<8x32x128xf32, #tpu.memory_space<vmem>>, vector<1x16x128xf32>
      %129 = vector.shape_cast %128 : vector<1x16x128xf32> to vector<16x128xf32>
      %130 = arith.addf %125, %129 : vector<16x128xf32>
      %cst_39 = arith.constant 1.000000e+00 : f32
      %131 = vector.broadcast %cst_39 : f32 to vector<16x128xf32>
      %132 = arith.cmpf oge, %130, %131 : vector<16x128xf32>
      %133 = arith.extui %132 : vector<16x128xi1> to vector<16x128xi32>
      %134 = arith.sitofp %133 : vector<16x128xi32> to vector<16x128xf32>
      %135 = arith.truncf %134 : vector<16x128xf32> to vector<16x128xbf16>
      %136 = arith.index_cast %c6_i32 : i32 to index
      %137 = arith.index_cast %7 : i32 to index
      %c0_40 = arith.constant 0 : index
      %138 = vector.load %arg4[%136, %137, %c0_40] : memref<8x32x128xbf16, #tpu.memory_space<vmem>>, vector<1x16x128xbf16>
      %139 = vector.shape_cast %138 : vector<1x16x128xbf16> to vector<16x128xbf16>
      %140 = vector.shape_cast %135 : vector<16x128xbf16> to vector<1x16x128xbf16>
      tpu.vector_store %arg4[%136, %137, %c0_40], %140 {strides = array<i32>} : memref<8x32x128xbf16, #tpu.memory_space<vmem>>, vector<1x16x128xbf16>,
      %cst_41 = arith.constant 0.000000e+00 : f32
      %141 = vector.broadcast %cst_41 : f32 to vector<16x128xf32>
      %142 = arith.select %132, %141, %130 : vector<16x128xi1>, vector<16x128xf32>
      %c7_i32 = arith.constant 7 : i32
      %cst_42 = arith.constant 0.899999976 : f32
      %143 = vector.broadcast %cst_42 : f32 to vector<16x128xf32>
      %144 = arith.mulf %143, %142 : vector<16x128xf32>
      %145 = arith.index_cast %c7_i32 : i32 to index
      %146 = arith.index_cast %7 : i32 to index
      %c0_43 = arith.constant 0 : index
      %147 = vector.load %arg3[%145, %146, %c0_43] : memref<8x32x128xf32, #tpu.memory_space<vmem>>, vector<1x16x128xf32>
      %148 = vector.shape_cast %147 : vector<1x16x128xf32> to vector<16x128xf32>
      %149 = arith.addf %144, %148 : vector<16x128xf32>
      %cst_44 = arith.constant 1.000000e+00 : f32
      %150 = vector.broadcast %cst_44 : f32 to vector<16x128xf32>
      %151 = arith.cmpf oge, %149, %150 : vector<16x128xf32>
      %152 = arith.extui %151 : vector<16x128xi1> to vector<16x128xi32>
      %153 = arith.sitofp %152 : vector<16x128xi32> to vector<16x128xf32>
      %154 = arith.truncf %153 : vector<16x128xf32> to vector<16x128xbf16>
      %155 = arith.index_cast %c7_i32 : i32 to index
      %156 = arith.index_cast %7 : i32 to index
      %c0_45 = arith.constant 0 : index
      %157 = vector.load %arg4[%155, %156, %c0_45] : memref<8x32x128xbf16, #tpu.memory_space<vmem>>, vector<1x16x128xbf16>
      %158 = vector.shape_cast %157 : vector<1x16x128xbf16> to vector<16x128xbf16>
      %159 = vector.shape_cast %154 : vector<16x128xbf16> to vector<1x16x128xbf16>
      tpu.vector_store %arg4[%155, %156, %c0_45], %159 {strides = array<i32>} : memref<8x32x128xbf16, #tpu.memory_space<vmem>>, vector<1x16x128xbf16>,
      %cst_46 = arith.constant 0.000000e+00 : f32
      %160 = vector.broadcast %cst_46 : f32 to vector<16x128xf32>
      %161 = arith.select %151, %160, %149 : vector<16x128xi1>, vector<16x128xf32>
      %c8_i32 = arith.constant 8 : i32
      %162 = arith.index_cast %7 : i32 to index
      %c0_47 = arith.constant 0 : index
      %163 = vector.load %arg5[%162, %c0_47] : memref<32x128xf32, #tpu.memory_space<vmem>>, vector<16x128xf32>
      tpu.vector_store %arg5[%162, %c0_47], %161 {strides = array<i32>} : memref<32x128xf32, #tpu.memory_space<vmem>>, vector<16x128xf32>,
    }
    %c2_i32_2 = arith.constant 2 : i32
    return
  }
  func.func @transform_0(%arg0: i32, %arg1: i32) -> (i32, i32) {
    %c0_i32 = arith.constant 0 : i32
    %c0_i32_0 = arith.constant 0 : i32
    return %arg0, %c0_i32 : i32, i32
  }
  func.func @transform_1(%arg0: i32, %arg1: i32) -> (i32, i32, i32) {
    %c0_i32 = arith.constant 0 : i32
    %c0_i32_0 = arith.constant 0 : i32
    return %arg1, %arg0, %c0_i32 : i32, i32, i32
  }
  func.func @transform_2(%arg0: i32, %arg1: i32) -> (i32, i32, i32) {
    %c0_i32 = arith.constant 0 : i32
    %c0_i32_0 = arith.constant 0 : i32
    return %arg1, %arg0, %c0_i32 : i32, i32, i32
  }
  func.func @transform_3(%arg0: i32, %arg1: i32) -> (i32, i32) {
    %c0_i32 = arith.constant 0 : i32
    %c0_i32_0 = arith.constant 0 : i32
    return %arg0, %c0_i32 : i32, i32
  }
}

</mosaic_0001>

<bundles_post_ra>
// kernel: spiking_neuron_forward.1
= control target key start
LH: loop header
LB: loop body
LE: loop exit
PB: predicated region body
PF: predicated region fallthrough
CT: control target
= control target key end

     0   :  { %s1250_s12 = smov 0   ;;  %s1252_s13 = smov 0   ;;  %s1487_s0 = inlined_call_operand.vmem [shape: f32[64,128], index: 0, kind: input, shape index: {}]   ;;  %s1488_s1 = inlined_call_operand.vmem [shape: f32[8,64,128], index: 1, kind: input, shape index: {}]   ;;  %s1489_s2 = inlined_call_operand.vmem [shape: bf16[8,64,128], index: 2, kind: output, shape index: {0}]   ;;  %s1490_s3 = inlined_call_operand.vmem [shape: f32[64,128], index: 3, kind: output, shape index: {1}]  }
   0x1   :  { %s1254_s14 = smov 0   ;;  %s1256_s15 = smov 0  }
   0x2   :  { %s1258_s16 = smov 0  }
   0x3 LB: > { %s26_s17 = sadd.s32 1, %s1219_s15  ;;  %s988_s18 = sadd.s32 4294967295, %s1223_s16   ;;  %s1223_s16 = sphi %s1258_s16, %s14_s16   ;;  %s1219_s15 = sphi %s1256_s15, %s1495_s15   ;;  %s1215_s14 = sphi %s1254_s14, %s1494_s14   ;;  %s1211_s13 = sphi %s1252_s13, %s1493_s13   ;;  %s1207_s12 = sphi %s1250_s12, %s1492_s12  }
   0x4   : > { %p28_p0 = scmp.ge.s32.totalorder %s26_s17, 2  ;;  %p68_p1 = scmp.ne.s32.totalorder %s1211_s13, %s1207_s12 }
   0x5   : > { %p69_p2 = scmp.eq.s32.totalorder %s1223_s16, 0  ;;  %p100_p4 = scmp.eq.s32.totalorder %s988_s18, 1 }
   0x6   : > { %s1497_s17 = smov (%p28_p0, %s26_s17), 0  ;;  %s61_s20 = sadd.s32 1, %s1211_s13 }
   0x7   : > { %p70_p3 = por %p69_p2, %p68_p1  ;;  %s57_s19 = ssub.s32 %s1219_s15, %s1497_s17 }
   0x8   : > { %p59_p5 = scmp.eq.s32.totalorder %s57_s19, 0  ;;  %p1285_p6 = por %p100_p4, %p68_p1 }
   0x9   : > { %p991_p7 = scmp.ge.s32.totalorder %s1223_s16, 2 }
   0xa   : > { %s1290_s22 = scalar_select %p59_p5, %s1211_s13, %s61_s20  }
   0xb   : > { %148 = sbr.rel (%p991_p7) target bundleno = 36 (0x24), region = 16 }
  0x10   : > { %160 = sbr.rel (!%p70_p3) target bundleno = 36 (0x24), region = 24  ;;  %s162_s23 = sand.u32 (%p70_p3), 1, %s1211_s13  }
  0x11   : > { %s1083_s24 = sshll.u32 (%p70_p3), %s1219_s15, 5  ;;  %s992_s25 = sshll.u32 (%p70_p3), %s162_s23, 8 }
  0x12   : > { %s1298_s28 = scalar_lea.vmem (%p70_p3), %s1488_s1, %s1083_s24  ;;  %s1303_s29 = scalar_lea.vmem (%p70_p3), [#allocation2], %s992_s25 }
  0x13   : > { %v261_v0 = vld [vmem:[%s1298_s28] sm:$0xff] (%p70_p3)  ;;  %v263_v1 = vld [vmem:[%s1298_s28 + $0x8] sm:$0xff] (%p70_p3)  ;;  %v265_v2 = vld [vmem:[%s1298_s28 + $0x10] sm:$0xff] (%p70_p3) }
  0x14   : > { %262 = vst [vmem:[%s1303_s29] sm:$0xff] (%p70_p3), %v261_v0  ;;  %264 = vst [vmem:[%s1303_s29 + $0x8] sm:$0xff] (%p70_p3), %v263_v1  ;;  %v267_v3 = vld [vmem:[%s1298_s28 + $0x18] sm:$0xff] (%p70_p3)  ;;  %v269_v4 = vld [vmem:[%s1298_s28 + $0x40] sm:$0xff] (%p70_p3) }
  0x15   : > { %266 = vst [vmem:[%s1303_s29 + $0x10] sm:$0xff] %v265_v2  ;;  %v271_v5 = vld [vmem:[%s1298_s28 + $0x48] sm:$0xff]  ;;  %268 = vst [vmem:[%s1303_s29 + $0x18] sm:$0xff] %v267_v3  ;;  %v273_v6 = vld [vmem:[%s1298_s28 + $0x50] sm:$0xff] }
  0x16   : > { %270 = vst [vmem:[%s1303_s29 + $0x20] sm:$0xff] %v269_v4  ;;  %272 = vst [vmem:[%s1303_s29 + $0x28] sm:$0xff] %v271_v5  ;;  %v275_v7 = vld [vmem:[%s1298_s28 + $0x58] sm:$0xff]  ;;  %v277_v8 = vld [vmem:[%s1298_s28 + $0x80] sm:$0xff] }
  0x17   : > { %274 = vst [vmem:[%s1303_s29 + $0x30] sm:$0xff] %v273_v6  ;;  %276 = vst [vmem:[%s1303_s29 + $0x38] sm:$0xff] %v275_v7  ;;  %v279_v9 = vld [vmem:[%s1298_s28 + $0x88] sm:$0xff]  ;;  %v281_v10 = vld [vmem:[%s1298_s28 + $0x90] sm:$0xff] }
  0x18   : > { %278 = vst [vmem:[%s1303_s29 + $0x40] sm:$0xff] %v277_v8  ;;  %v283_v11 = vld [vmem:[%s1298_s28 + $0x98] sm:$0xff]  ;;  %280 = vst [vmem:[%s1303_s29 + $0x48] sm:$0xff] %v279_v9  ;;  %v285_v12 = vld [vmem:[%s1298_s28 + $0xc0] sm:$0xff] }
  0x19   : > { %282 = vst [vmem:[%s1303_s29 + $0x50] sm:$0xff] %v281_v10  ;;  %284 = vst [vmem:[%s1303_s29 + $0x58] sm:$0xff] %v283_v11  ;;  %v287_v13 = vld [vmem:[%s1298_s28 + $0xc8] sm:$0xff]  ;;  %v289_v14 = vld [vmem:[%s1298_s28 + $0xd0] sm:$0xff] }
  0x1a   : > { %286 = vst [vmem:[%s1303_s29 + $0x60] sm:$0xff] %v285_v12  ;;  %288 = vst [vmem:[%s1303_s29 + $0x68] sm:$0xff] %v287_v13  ;;  %v291_v15 = vld [vmem:[%s1298_s28 + $0xd8] sm:$0xff]  ;;  %v293_v16 = vld [vmem:[%s1298_s28 + $0x100] sm:$0xff] }
  0x1b   : > { %290 = vst [vmem:[%s1303_s29 + $0x70] sm:$0xff] %v289_v14  ;;  %v295_v17 = vld [vmem:[%s1298_s28 + $0x108] sm:$0xff]  ;;  %292 = vst [vmem:[%s1303_s29 + $0x78] sm:$0xff] %v291_v15  ;;  %v297_v18 = vld [vmem:[%s1298_s28 + $0x110] sm:$0xff] }
  0x1c   : > { %294 = vst [vmem:[%s1303_s29 + $0x80] sm:$0xff] %v293_v16  ;;  %296 = vst [vmem:[%s1303_s29 + $0x88] sm:$0xff] %v295_v17  ;;  %v299_v19 = vld [vmem:[%s1298_s28 + $0x118] sm:$0xff]  ;;  %v301_v20 = vld [vmem:[%s1298_s28 + $0x140] sm:$0xff] }
  0x1d   : > { %298 = vst [vmem:[%s1303_s29 + $0x90] sm:$0xff] %v297_v18  ;;  %300 = vst [vmem:[%s1303_s29 + $0x98] sm:$0xff] %v299_v19  ;;  %v303_v21 = vld [vmem:[%s1298_s28 + $0x148] sm:$0xff]  ;;  %v305_v22 = vld [vmem:[%s1298_s28 + $0x150] sm:$0xff] }
  0x1e   : > { %302 = vst [vmem:[%s1303_s29 + $0xa0] sm:$0xff] %v301_v20  ;;  %v307_v23 = vld [vmem:[%s1298_s28 + $0x158] sm:$0xff]  ;;  %304 = vst [vmem:[%s1303_s29 + $0xa8] sm:$0xff] %v303_v21  ;;  %v309_v24 = vld [vmem:[%s1298_s28 + $0x180] sm:$0xff] }
  0x1f   : > { %306 = vst [vmem:[%s1303_s29 + $0xb0] sm:$0xff] %v305_v22  ;;  %308 = vst [vmem:[%s1303_s29 + $0xb8] sm:$0xff] %v307_v23  ;;  %v311_v25 = vld [vmem:[%s1298_s28 + $0x188] sm:$0xff]  ;;  %v313_v26 = vld [vmem:[%s1298_s28 + $0x190] sm:$0xff] }
  0x20   : > { %310 = vst [vmem:[%s1303_s29 + $0xc0] sm:$0xff] %v309_v24  ;;  %312 = vst [vmem:[%s1303_s29 + $0xc8] sm:$0xff] %v311_v25  ;;  %v315_v27 = vld [vmem:[%s1298_s28 + $0x198] sm:$0xff]  ;;  %v317_v28 = vld [vmem:[%s1298_s28 + $0x1c0] sm:$0xff] }
  0x21   : > { %314 = vst [vmem:[%s1303_s29 + $0xd0] sm:$0xff] %v313_v26  ;;  %v319_v29 = vld [vmem:[%s1298_s28 + $0x1c8] sm:$0xff]  ;;  %316 = vst [vmem:[%s1303_s29 + $0xd8] sm:$0xff] %v315_v27  ;;  %v321_v30 = vld [vmem:[%s1298_s28 + $0x1d0] sm:$0xff] }
  0x22   : > { %318 = vst [vmem:[%s1303_s29 + $0xe0] sm:$0xff] %v317_v28  ;;  %320 = vst [vmem:[%s1303_s29 + $0xe8] sm:$0xff] %v319_v29  ;;  %v323_v31 = vld [vmem:[%s1298_s28 + $0x1d8] sm:$0xff] }
  0x23   : > { %322 = vst [vmem:[%s1303_s29 + $0xf0] sm:$0xff] %v321_v30  ;;  %324 = vst [vmem:[%s1303_s29 + $0xf8] sm:$0xff] %v323_v31 }
  0x24 PF: > { %p995_p8 = scmp.ge.s32.totalorder %s1223_s16, 1  ;;  %p329_p9 = scmp.lt.s32.totalorder %s1223_s16, 3 }
  0x26   : > { %p330_p10 = pnand %p995_p8, %p329_p9 }
  0x27   : > { %s336_s30 = sand.u32 (!%p330_p10), 1, %s1207_s12   ;;  %s998_s4 = sshll.u32 (!%p330_p10), %s1215_s14, 2 }
  0x28   : > { %333 = sbr.rel (%p330_p10) target bundleno = 125 (0x7d), region = 62  ;;  %s1370_s5 = sshll.u32 (!%p330_p10), %s336_s30, 8 }
  0x29   : > { %s997_s6 = sshll.u32 (!%p330_p10), %s336_s30, 7  ;;  %p369_p11 = scmp.lt.s32.totalorder (!%p330_p10), %s998_s4, 7 }
  0x2a   : > { %s338_s12 = scalar_lea.vmem (!%p330_p10), [#allocation2], %s1370_s5  ;;  %s1385_s20 = scalar_lea.vmem (!%p330_p10), [#allocation3], %s997_s6 }
  0x2b   : > { %s1387_s23 = smov (!%p330_p10), 0  }
  0x2d   : > { %s1499_s4 = smov (!%p369_p11, %s998_s4), 7 }
  0x2e   : > { %s999_s7 = sshll.u32 %s1499_s4, 3 }
  0x2f   : > { %s372_s10 = scalar_lea.vmem %s1487_s0, %s999_s7  ;;  %s1378_s19 = scalar_lea.vmem %s1490_s3, %s999_s7 }
  0x30   : > { %v388_v32 = vld [vmem:[%s372_s10] sm:$0xff]  ;;  %v389_v33 = vld [vmem:[%s372_s10 + $0x8] sm:$0xff]  ;;  %v390_v34 = vld [vmem:[%s372_s10 + $0x10] sm:$0xff] }
  0x31   : > { %392 = vst [vmem:[%s1378_s19] sm:$0xff] %v388_v32  ;;  %v391_v35 = vld [vmem:[%s372_s10 + $0x18] sm:$0xff]  ;;  %393 = vst [vmem:[%s1378_s19 + $0x8] sm:$0xff] %v389_v33 }
  0x32   : > { %394 = vst [vmem:[%s1378_s19 + $0x10] sm:$0xff] %v390_v34  ;;  %395 = vst [vmem:[%s1378_s19 + $0x18] sm:$0xff] %v391_v35 }
  0x33 LB: >> { %s1002_s24 = sshll.u32 %s1227_s23, 4  ;;  %v1229_v44 = vmov 0.0   ;;  %s401_s23 = sadd.s32 1, %s1227_s23   ;;  %s1227_s23 = sphi %s1387_s23, %s401_s23  }
  0x34   : >> { %s1394_s25 = scalar_lea.vmem %s1378_s19, %s1002_s24  ;;  %s1398_s26 = scalar_lea.vmem %s338_s12, %s1002_s24 [#allocation2] }
  0x35   : >> { %v409_v38 = vld [vmem:[%s1398_s26] sm:$0xff]  ;;  %s427_s27 = sshra.s32 %s1002_s24, 3  ;;  %v410_v41 = vld [vmem:[%s1398_s26 + $0x8] sm:$0xff]  ;;  %p398_p12 = scmp.ge.s32.totalorder %s401_s23, 2  }
  0x36   : >> { %s1007_s28 = sshll.u32 %s427_s27, 2  ;;  %v1009_v49 = vld [vmem:[%s1398_s26 + $0x20] sm:$0xff]  ;;  %v1010_v50 = vld [vmem:[%s1398_s26 + $0x28] sm:$0xff] }
  0x37   : >> { %s1407_s29 = scalar_lea.vmem %s1385_s20, %s1007_s28 [#allocation3]  ;;  %v1019_v60 = vld [vmem:[%s1398_s26 + $0x40] sm:$0xff]  ;;  %v1020_v61 = vld [vmem:[%s1398_s26 + $0x48] sm:$0xff] }
  0x38   : >> { %v1029_v7 = vld [vmem:[%s1398_s26 + $0x60] sm:$0xff]  ;;  %v1030_v8 = vld [vmem:[%s1398_s26 + $0x68] sm:$0xff] }
  0x39   : >> { %v404_v36 = vld [vmem:[%s1394_s25] sm:$0xff]  ;;  %v405_v37 = vld [vmem:[%s1394_s25 + $0x8] sm:$0xff] }
  0x3a   : >> { %v406_v39 = vmul.f32 0.9, %v404_v36  ;;  %v407_v40 = vmul.f32 0.9, %v405_v37  ;;  %v1039_v18 = vld [vmem:[%s1398_s26 + $0x80] sm:$0xff]  ;;  %v1040_v19 = vld [vmem:[%s1398_s26 + $0x88] sm:$0xff] }
  0x3b   : >> { %v1049_v29 = vld [vmem:[%s1398_s26 + $0xa0] sm:$0xff]  ;;  %v1050_v30 = vld [vmem:[%s1398_s26 + $0xa8] sm:$0xff] }
  0x3c   : >> { %v411_v42 = vadd.f32 %v409_v38, %v406_v39  ;;  %v412_v43 = vadd.f32 %v410_v41, %v407_v40  ;;  %v1059_v40 = vld [vmem:[%s1398_s26 + $0xc0] sm:$0xff]  ;;  %v1060_v41 = vld [vmem:[%s1398_s26 + $0xc8] sm:$0xff] }
  0x3e   : >> { %vm413_vm0 = vcmp.ge.f32.partialorder %v411_v42, 1.0  ;;  %vm414_vm1 = vcmp.ge.f32.partialorder %v412_v43, 1.0 }
  0x3f   : >> { %v1003_v45 = vsel %vm413_vm0, 1.0, %v1229_v44  ;;  %v1004_v46 = vsel %vm414_vm1, 1.0, %v1229_v44  ;;  %v433_v47 = vsel %vm413_vm0, 0.0, %v411_v42  ;;  %v434_v48 = vsel %vm414_vm1, 0.0, %v412_v43 }
  0x40   : >> { %v1102_v51 = vpack.c.bf16 %v1004_v46, %v1003_v45  ;;  %v435_v52 = vmul.f32 0.9, %v433_v47  ;;  %v436_v53 = vmul.f32 0.9, %v434_v48 }
  0x42   : >> { %1103 = vst [vmem:[%s1407_s29] sm:$0xff] %v1102_v51   ;;  %v441_v54 = vadd.f32 %v1009_v49, %v435_v52  ;;  %v442_v55 = vadd.f32 %v1010_v50, %v436_v53  ;;  %v1069_v52 = vld [vmem:[%s1398_s26 + $0xe0] sm:$0xff]  ;;  %v1070_v53 = vld [vmem:[%s1398_s26 + $0xe8] sm:$0xff] }
  0x44   : >> { %vm443_vm2 = vcmp.ge.f32.partialorder %v441_v54, 1.0  ;;  %vm444_vm3 = vcmp.ge.f32.partialorder %v442_v55, 1.0 }
  0x45   : >> { %v1011_v56 = vsel %vm443_vm2, 1.0, %v1229_v44  ;;  %v1012_v57 = vsel %vm444_vm3, 1.0, %v1229_v44  ;;  %v462_v58 = vsel %vm443_vm2, 0.0, %v441_v54  ;;  %v463_v59 = vsel %vm444_vm3, 0.0, %v442_v55 }
  0x46   : >> { %v1105_v62 = vpack.c.bf16 %v1012_v57, %v1011_v56  ;;  %v464_v63 = vmul.f32 0.9, %v462_v58  ;;  %v465_v0 = vmul.f32 0.9, %v463_v59 }
  0x48   : >> { %1125 = vst [vmem:[%s1407_s29 + $0x10] sm:$0xff] %v1105_v62   ;;  %v470_v1 = vadd.f32 %v1019_v60, %v464_v63  ;;  %v471_v2 = vadd.f32 %v1020_v61, %v465_v0 }
  0x4a   : >> { %vm472_vm4 = vcmp.ge.f32.partialorder %v470_v1, 1.0  ;;  %vm473_vm5 = vcmp.ge.f32.partialorder %v471_v2, 1.0 }
  0x4b   : >> { %v1021_v3 = vsel %vm472_vm4, 1.0, %v1229_v44  ;;  %v1022_v4 = vsel %vm473_vm5, 1.0, %v1229_v44  ;;  %v491_v5 = vsel %vm472_vm4, 0.0, %v470_v1  ;;  %v492_v6 = vsel %vm473_vm5, 0.0, %v471_v2 }
  0x4c   : >> { %v1108_v9 = vpack.c.bf16 %v1022_v4, %v1021_v3  ;;  %v493_v10 = vmul.f32 0.9, %v491_v5  ;;  %v494_v11 = vmul.f32 0.9, %v492_v6 }
  0x4e   : >> { %1126 = vst [vmem:[%s1407_s29 + $0x20] sm:$0xff] %v1108_v9   ;;  %v499_v12 = vadd.f32 %v1029_v7, %v493_v10  ;;  %v500_v13 = vadd.f32 %v1030_v8, %v494_v11 }
  0x50   : >> { %vm501_vm6 = vcmp.ge.f32.partialorder %v499_v12, 1.0  ;;  %vm502_vm7 = vcmp.ge.f32.partialorder %v500_v13, 1.0 }
  0x51   : >> { %v1031_v14 = vsel %vm501_vm6, 1.0, %v1229_v44  ;;  %v1032_v15 = vsel %vm502_vm7, 1.0, %v1229_v44  ;;  %v520_v16 = vsel %vm501_vm6, 0.0, %v499_v12  ;;  %v521_v17 = vsel %vm502_vm7, 0.0, %v500_v13 }
  0x52   : >> { %v1111_v20 = vpack.c.bf16 %v1032_v15, %v1031_v14  ;;  %v522_v21 = vmul.f32 0.9, %v520_v16  ;;  %v523_v22 = vmul.f32 0.9, %v521_v17 }
  0x54   : >> { %1127 = vst [vmem:[%s1407_s29 + $0x30] sm:$0xff] %v1111_v20   ;;  %v528_v23 = vadd.f32 %v1039_v18, %v522_v21  ;;  %v529_v24 = vadd.f32 %v1040_v19, %v523_v22 }
  0x56   : >> { %vm530_vm8 = vcmp.ge.f32.partialorder %v528_v23, 1.0  ;;  %vm531_vm9 = vcmp.ge.f32.partialorder %v529_v24, 1.0 }
  0x57   : >> { %v1041_v25 = vsel %vm530_vm8, 1.0, %v1229_v44  ;;  %v1042_v26 = vsel %vm531_vm9, 1.0, %v1229_v44  ;;  %v549_v27 = vsel %vm530_vm8, 0.0, %v528_v23  ;;  %v550_v28 = vsel %vm531_vm9, 0.0, %v529_v24 }
  0x58   : >> { %v1114_v31 = vpack.c.bf16 %v1042_v26, %v1041_v25  ;;  %v551_v32 = vmul.f32 0.9, %v549_v27  ;;  %v552_v33 = vmul.f32 0.9, %v550_v28 }
  0x5a   : >> { %1128 = vst [vmem:[%s1407_s29 + $0x40] sm:$0xff] %v1114_v31   ;;  %v557_v34 = vadd.f32 %v1049_v29, %v551_v32  ;;  %v558_v35 = vadd.f32 %v1050_v30, %v552_v33 }
  0x5c   : >> { %vm559_vm10 = vcmp.ge.f32.partialorder %v557_v34, 1.0  ;;  %vm560_vm11 = vcmp.ge.f32.partialorder %v558_v35, 1.0 }
  0x5d   : >> { %v1051_v36 = vsel %vm559_vm10, 1.0, %v1229_v44  ;;  %v1052_v37 = vsel %vm560_vm11, 1.0, %v1229_v44  ;;  %v578_v38 = vsel %vm559_vm10, 0.0, %v557_v34  ;;  %v579_v39 = vsel %vm560_vm11, 0.0, %v558_v35 }
  0x5e   : >> { %v1117_v42 = vpack.c.bf16 %v1052_v37, %v1051_v36  ;;  %v580_v43 = vmul.f32 0.9, %v578_v38  ;;  %v581_v45 = vmul.f32 0.9, %v579_v39 }
  0x60   : >> { %1129 = vst [vmem:[%s1407_s29 + $0x50] sm:$0xff] %v1117_v42   ;;  %v586_v46 = vadd.f32 %v1059_v40, %v580_v43  ;;  %v587_v47 = vadd.f32 %v1060_v41, %v581_v45 }
  0x62   : >> { %vm588_vm12 = vcmp.ge.f32.partialorder %v586_v46, 1.0  ;;  %vm589_vm13 = vcmp.ge.f32.partialorder %v587_v47, 1.0 }
  0x63   : >> { %v1061_v48 = vsel %vm588_vm12, 1.0, %v1229_v44  ;;  %v1062_v49 = vsel %vm589_vm13, 1.0, %v1229_v44  ;;  %v607_v50 = vsel %vm588_vm12, 0.0, %v586_v46  ;;  %v608_v51 = vsel %vm589_vm13, 0.0, %v587_v47 }
  0x64   : >> { %v1120_v54 = vpack.c.bf16 %v1062_v49, %v1061_v48  ;;  %v609_v55 = vmul.f32 0.9, %v607_v50  ;;  %v610_v56 = vmul.f32 0.9, %v608_v51 }
  0x66   : >> { %1130 = vst [vmem:[%s1407_s29 + $0x60] sm:$0xff] %v1120_v54   ;;  %v615_v57 = vadd.f32 %v1069_v52, %v609_v55  ;;  %v616_v58 = vadd.f32 %v1070_v53, %v610_v56 }
  0x68   : >> { %vm617_vm14 = vcmp.ge.f32.partialorder %v615_v57, 1.0  ;;  %vm618_vm15 = vcmp.ge.f32.partialorder %v616_v58, 1.0  ;;  %400 = sbr.rel (!%p398_p12) target bundleno = 51 (0x33), region = 185 }
  0x69   : >> { %v1071_v59 = vsel %vm617_vm14, 1.0, %v1229_v44  ;;  %v1072_v60 = vsel %vm618_vm15, 1.0, %v1229_v44  ;;  %v636_v61 = vsel %vm617_vm14, 0.0, %v615_v57  ;;  %v637_v62 = vsel %vm618_vm15, 0.0, %v616_v58 }
  0x6a   : >> { %v1123_v63 = vpack.c.bf16 %v1072_v60, %v1071_v59  ;;  %638 = vst [vmem:[%s1394_s25] sm:$0xff] %v636_v61  ;;  %639 = vst [vmem:[%s1394_s25 + $0x8] sm:$0xff] %v637_v62 }
  0x6c   : >> { %1131 = vst [vmem:[%s1407_s29 + $0x70] sm:$0xff] %v1123_v63  }
  0x6d   : > { %651 = sbr.rel (!%p1285_p6) target bundleno = 125 (0x7d), region = 81  ;;  %s1100_s30 = sshll.u32 (%p1285_p6), %s1215_s14, 4 }
  0x6e   : > { %s657_s5 = scalar_lea.vmem (%p1285_p6), %s1489_s2, %s1100_s30 }
  0x73   : > { %v674_v44 = vld [vmem:[%s1385_s20] sm:$0xff]   ;;  %v678_v0 = vld [vmem:[%s1385_s20 + $0x8] sm:$0xff]   ;;  %v682_v1 = vld [vmem:[%s1385_s20 + $0x10] sm:$0xff]  }
  0x74   : > { %v686_v2 = vld [vmem:[%s1385_s20 + $0x18] sm:$0xff]   ;;  %v690_v3 = vld [vmem:[%s1385_s20 + $0x20] sm:$0xff]   ;;  %v694_v4 = vld [vmem:[%s1385_s20 + $0x28] sm:$0xff]   ;;  %675 = vst [vmem:[%s657_s5] sm:$0xff] %v674_v44  }
  0x75   : > { %679 = vst [vmem:[%s657_s5 + $0x8] sm:$0xff] %v678_v0   ;;  %683 = vst [vmem:[%s657_s5 + $0x20] sm:$0xff] %v682_v1   ;;  %v698_v5 = vld [vmem:[%s1385_s20 + $0x30] sm:$0xff]   ;;  %v702_v6 = vld [vmem:[%s1385_s20 + $0x38] sm:$0xff]  }
  0x76   : > { %687 = vst [vmem:[%s657_s5 + $0x28] sm:$0xff] %v686_v2   ;;  %691 = vst [vmem:[%s657_s5 + $0x40] sm:$0xff] %v690_v3   ;;  %v706_v7 = vld [vmem:[%s1385_s20 + $0x40] sm:$0xff]   ;;  %v710_v8 = vld [vmem:[%s1385_s20 + $0x48] sm:$0xff]  }
  0x77   : > { %695 = vst [vmem:[%s657_s5 + $0x48] sm:$0xff] %v694_v4   ;;  %699 = vst [vmem:[%s657_s5 + $0x60] sm:$0xff] %v698_v5   ;;  %v714_v9 = vld [vmem:[%s1385_s20 + $0x50] sm:$0xff]   ;;  %v718_v10 = vld [vmem:[%s1385_s20 + $0x58] sm:$0xff]  }
  0x78   : > { %703 = vst [vmem:[%s657_s5 + $0x68] sm:$0xff] %v702_v6   ;;  %707 = vst [vmem:[%s657_s5 + $0x80] sm:$0xff] %v706_v7   ;;  %v722_v11 = vld [vmem:[%s1385_s20 + $0x60] sm:$0xff]   ;;  %v726_v12 = vld [vmem:[%s1385_s20 + $0x68] sm:$0xff]  }
  0x79   : > { %711 = vst [vmem:[%s657_s5 + $0x88] sm:$0xff] %v710_v8   ;;  %715 = vst [vmem:[%s657_s5 + $0xa0] sm:$0xff] %v714_v9   ;;  %v730_v13 = vld [vmem:[%s1385_s20 + $0x70] sm:$0xff]   ;;  %v734_v14 = vld [vmem:[%s1385_s20 + $0x78] sm:$0xff]  }
  0x7a   : > { %719 = vst [vmem:[%s657_s5 + $0xa8] sm:$0xff] %v718_v10   ;;  %723 = vst [vmem:[%s657_s5 + $0xc0] sm:$0xff] %v722_v11  }
  0x7b   : > { %727 = vst [vmem:[%s657_s5 + $0xc8] sm:$0xff] %v726_v12   ;;  %731 = vst [vmem:[%s657_s5 + $0xe0] sm:$0xff] %v730_v13  }
  0x7c   : > { %735 = vst [vmem:[%s657_s5 + $0xe8] sm:$0xff] %v734_v14  }
  0x7d PF: > { %s14_s16 = sadd.s32 1, %s1223_s16   ;;  %s1492_s12 = smov %s1211_s13 }
  0x7e   : > { %p11_p13 = scmp.ge.s32.totalorder %s14_s16, 4   ;;  %s1493_s13 = smov %s1290_s22 }
  0x7f   : > { %s1494_s14 = smov %s1219_s15  ;;  %s1495_s15 = smov %s1497_s17 }
  0x80   :  { %13 = sbr.rel (!%p11_p13) target bundleno = 3 (0x3), region = 196 }

</bundles_post_ra>
